<compile_context>
chip_gen: v6e
topology: v6e:2x2x1
jax: 0.10.0
libtpu: 0.0.40
codegen_flags: <defaults>
</compile_context>

<pallas_src>
import math

import jax
import jax.numpy as jnp
from jax.experimental import pallas as pl
from jax.experimental.pallas import tpu as pltpu

IN_FEATURES = 5

_VMEM_LIMIT_BYTES = 48 * 1024 * 1024    # scoped-VMEM limit handed to Mosaic (<= v7x physical)
_TILE_BUDGET_BYTES = 32 * 1024 * 1024   # budget for the double-buffered input/output tiles
_MAX_ROW_TILE = 2048                    # diminishing returns past ~1-2k rows (mem-bound)


def _round_up(x, m):
    return (x + m - 1) // m * m


def _linear_kernel(x_ref, w_ref, b_ref, o_ref):
    # x_ref: (tr, Kin) row tile, w_ref: (Kin, Dout) full weight, b_ref: (1, Dout)
    y = jnp.dot(x_ref[...], w_ref[...], preferred_element_type=jnp.float32)
    o_ref[...] = (y + b_ref[...]).astype(o_ref.dtype)


def _grouping_factor(d):
    """How many tokens to fold per output row so the output last dim is a multiple of 128."""
    if d % 128 == 0:
        return 1
    g = 128 // math.gcd(d, 128)
    # Only group while the replicated block-diagonal weight stays tiny.
    if (g * IN_FEATURES) * (g * d) * 4 <= (2 << 20):
        return g
    return 1


def _choose_row_tile(n_rows, kin, dout, in_itemsize, out_itemsize):
    # VMEM cost per row, double-buffered; minor dims pad to 128 lanes in VMEM.
    per_row = 2 * (in_itemsize * _round_up(kin, 128)
                   + out_itemsize * _round_up(dout, 128))
    tr = _TILE_BUDGET_BYTES // per_row
    tr = max(8, min(tr, _MAX_ROW_TILE))
    tr = (tr // 8) * 8
    if n_rows <= tr:
        return n_rows          # single full-extent block (always layout-legal)
    return tr


def spatial_encoding(x, weight, bias, *, out_dtype=None):
    """Apply Linear(5, embed_dim) over the last dim of x.

    x:      (..., 5)
    weight: (embed_dim, 5)   (PyTorch convention)
    bias:   (embed_dim,)
    returns (..., embed_dim)
    """
    assert x.shape[-1] == IN_FEATURES
    embed_dim = weight.shape[0]
    out_dtype = out_dtype or x.dtype   # pass jnp.bfloat16 to halve output traffic

    lead_shape = x.shape[:-1]
    n = int(math.prod(lead_shape)) if lead_shape else 1
    x2 = x.reshape(n, IN_FEATURES)

    w_t = weight.T.astype(x.dtype)     # (5, D)

    g = _grouping_factor(embed_dim)
    if g > 1:
        # Fold g tokens into one lane-dense output row of width g*D (multiple of 128).
        n_g = _round_up(n, g)
        if n_g != n:                   # at most g-1 extra rows; negligible traffic
            x2 = jnp.pad(x2, ((0, n_g - n), (0, 0)))
        rows = n_g // g
        kin, dout = g * IN_FEATURES, g * embed_dim
        x_in = x2.reshape(rows, kin)   # free row-major view
        w_in = jnp.zeros((kin, dout), w_t.dtype)
        for i in range(g):             # block-diagonal replication of W^T
            w_in = w_in.at[i * IN_FEATURES:(i + 1) * IN_FEATURES,
                           i * embed_dim:(i + 1) * embed_dim].set(w_t)
        b_in = jnp.tile(bias.astype(x.dtype), g).reshape(1, dout)
    else:
        rows, kin, dout = n, IN_FEATURES, embed_dim
        x_in = x2
        w_in = w_t
        b_in = bias.astype(x.dtype).reshape(1, embed_dim)

    tr = _choose_row_tile(rows, kin, dout,
                          jnp.dtype(x.dtype).itemsize,
                          jnp.dtype(out_dtype).itemsize)

    out2 = pl.pallas_call(
        _linear_kernel,
        out_shape=jax.ShapeDtypeStruct((rows, dout), out_dtype),
        grid_spec=pltpu.PrefetchScalarGridSpec(
            num_scalar_prefetch=0,
            grid=(pl.cdiv(rows, tr),),             # ragged last block handled by Pallas
            in_specs=[
                pl.BlockSpec((tr, kin), lambda i: (i, 0)),
                pl.BlockSpec((kin, dout), lambda i: (0, 0)),
                pl.BlockSpec((1, dout), lambda i: (0, 0)),
            ],
            out_specs=pl.BlockSpec((tr, dout), lambda i: (i, 0)),
        ),
        compiler_params=pltpu.CompilerParams(
            dimension_semantics=("parallel",),     # megacore sharding on v7x
            vmem_limit_bytes=_VMEM_LIMIT_BYTES,
        ),
    )(x_in, w_in, b_in)

    if g > 1:
        out = out2.reshape(rows * g, embed_dim)[:n]   # free view + tiny slice
    else:
        out = out2
    return out.reshape(*lead_shape, embed_dim)


if __name__ == "__main__":
    # Small shapes consistent with the module: batch=2, seq=8, embed_dim=32.
    batch, seq, embed_dim = 2, 8, 32

    key = jax.random.PRNGKey(0)
    kx, kw, kb = jax.random.split(key, 3)

    # Deterministic init mimicking nn.Linear default (uniform +/- 1/sqrt(fan_in)).
    bound = 1.0 / math.sqrt(IN_FEATURES)
    weight = jax.random.uniform(
        kw, (embed_dim, IN_FEATURES), jnp.float32, -bound, bound)
    bias = jax.random.uniform(kb, (embed_dim,), jnp.float32, -bound, bound)

    # x: (batch, seq, 5) bounding-box coords + relative-size features.
    x = jax.random.uniform(kx, (batch, seq, IN_FEATURES), jnp.float32)

    y = spatial_encoding(x, weight, bias)
    y = jax.block_until_ready(y)

    # Reference check against plain JAX linear.
    y_ref = x @ weight.T + bias
    assert y.shape == (batch, seq, embed_dim)
    assert jnp.allclose(y, y_ref, atol=1e-4), "mismatch vs reference"

    print("KERNEL_OK")
</pallas_src>

<mosaic_0001>
module attributes {stable_mosaic.version = 11 : i64} {
  func.func @_linear_kernel(%arg0: i32, %arg1: memref<4x20xf32, #tpu.memory_space<vmem>>, %arg2: memref<20x128xf32, #tpu.memory_space<vmem>>, %arg3: memref<1x128xf32, #tpu.memory_space<vmem>>, %arg4: memref<4x128xf32, #tpu.memory_space<vmem>>) attributes {dimension_semantics = [#tpu.dimension_semantics<parallel>], iteration_bounds = array<i64: 1>, scalar_prefetch = 0 : i64, scratch_operands = 0 : i64, tpu.core_type = #tpu.core_type<tc>, window_params = [{transform_indices = @transform_0, window_bounds = array<i64: 4, 20>}, {pipeline_mode = #tpu.pipeline_mode<synchronous>, transform_indices = @transform_1, window_bounds = array<i64: 20, 128>}, {pipeline_mode = #tpu.pipeline_mode<synchronous>, transform_indices = @transform_2, window_bounds = array<i64: 1, 128>}, {transform_indices = @transform_3, window_bounds = array<i64: 4, 128>}]} {
    %c0 = arith.constant 0 : index
    %c0_0 = arith.constant 0 : index
    %0 = vector.load %arg1[%c0, %c0_0] : memref<4x20xf32, #tpu.memory_space<vmem>>, vector<4x20xf32>
    %c0_1 = arith.constant 0 : index
    %c0_2 = arith.constant 0 : index
    %1 = vector.load %arg2[%c0_1, %c0_2] : memref<20x128xf32, #tpu.memory_space<vmem>>, vector<20x128xf32>
    %cst = arith.constant dense<0.000000e+00> : vector<4x128xf32>
    %2 = tpu.matmul %0, %1, %cst {dimension_numbers = #tpu.dot_dimension_numbers<[1], [0], [0], [1], [0, 0, 1, 1], [], []>} : vector<4x20xf32>, vector<20x128xf32>, vector<4x128xf32> -> vector<4x128xf32>
    %c0_3 = arith.constant 0 : index
    %c0_4 = arith.constant 0 : index
    %3 = vector.load %arg3[%c0_3, %c0_4] : memref<1x128xf32, #tpu.memory_space<vmem>>, vector<1x128xf32>
    %4 = vector.broadcast %3 : vector<1x128xf32> to vector<4x128xf32>
    %5 = arith.addf %2, %4 : vector<4x128xf32>
    %c0_5 = arith.constant 0 : index
    %c0_6 = arith.constant 0 : index
    %6 = vector.load %arg4[%c0_5, %c0_6] : memref<4x128xf32, #tpu.memory_space<vmem>>, vector<4x128xf32>
    tpu.vector_store %arg4[%c0_5, %c0_6], %5 {strides = array<i32>} : memref<4x128xf32, #tpu.memory_space<vmem>>, vector<4x128xf32>,
    return
  }
  func.func @transform_0(%arg0: i32) -> (i32, i32) {
    %c0_i32 = arith.constant 0 : i32
    %c0_i32_0 = arith.constant 0 : i32
    return %arg0, %c0_i32 : i32, i32
  }
  func.func @transform_1(%arg0: i32) -> (i32, i32) {
    %c0_i32 = arith.constant 0 : i32
    %c0_i32_0 = arith.constant 0 : i32
    %c0_i32_1 = arith.constant 0 : i32
    return %c0_i32, %c0_i32_0 : i32, i32
  }
  func.func @transform_2(%arg0: i32) -> (i32, i32) {
    %c0_i32 = arith.constant 0 : i32
    %c0_i32_0 = arith.constant 0 : i32
    %c0_i32_1 = arith.constant 0 : i32
    return %c0_i32, %c0_i32_0 : i32, i32
  }
  func.func @transform_3(%arg0: i32) -> (i32, i32) {
    %c0_i32 = arith.constant 0 : i32
    %c0_i32_0 = arith.constant 0 : i32
    return %arg0, %c0_i32 : i32, i32
  }
}

</mosaic_0001>

<bundles_post_ra>
// kernel: tpu_custom_call.1
= control target key start
LH: loop header
LB: loop body
LE: loop exit
PB: predicated region body
PF: predicated region fallthrough
CT: control target
= control target key end

     0   :  { %8 = vsyncpa [#allocation3], 0  ;;  %s275_s0 = inlined_call_operand.hbm [shape: f32[4,20], index: 0, kind: input, shape index: {}]   ;;  %s276_s1 = inlined_call_operand.hbm [shape: f32[20,128], index: 1, kind: input, shape index: {}]   ;;  %s277_s2 = inlined_call_operand.vmem [shape: f32[1,128], index: 2, kind: input, shape index: {}]   ;;  %s278_s3 = inlined_call_operand.hbm [shape: f32[4,128], index: 3, kind: output, shape index: {}]  }
   0x1   :  { %9 = vsyncpa [#allocation6], 0 }
   0x2   :  { %10 = vsyncpa [#allocation4], 0  ;;  %s236_s12 = smov [#allocation2]   ;;  %s237_s14 = smov [#allocation5]  }
   0x3   :  { %s17_s13 = sshll.u32 %s236_s12, 4  ;;  %s26_s15 = sshll.u32 %s237_s14, 4  ;;  %s18_s13 = int_to_ptr.vmem [resolvable:$true] %s17_s13  ;;  %s27_s15 = int_to_ptr.vmem [resolvable:$true] %s26_s15 }
   0x4   :  { %s178_s16 = scalar_lea.vmem %s18_s13, 64  ;;  %p183_p1 = scmp.lt.s32.totalorder %s18_s13, %s18_s13 }
   0x5   :  { %p179_p0 = scmp.ne.s32.totalorder %s18_s13, %s178_s16  ;;  %p184_p2 = scmp.lt.s32.totalorder %s178_s16, %s178_s16 }
   0x7   :  { %p185_p3 = por %p184_p2, %p183_p1 }
   0x9   :  { %p186_p4 = pnand %p185_p3, %p179_p0 }
   0xb   :  { %189 = shalt.err (!%p186_p4)
}
   0xc   :  { %20 = dma.hbm_to_vmem [thread:$0]  %s275_s0, 64, %s18_s13, [#allocation3]  }
   0xd   :  { %s198_s19 = scalar_lea.vmem %s27_s15, 384  ;;  %p203_p6 = scmp.lt.s32.totalorder %s27_s15, %s27_s15 }
   0xe   :  { %p199_p5 = scmp.ne.s32.totalorder %s27_s15, %s198_s19  ;;  %p204_p7 = scmp.lt.s32.totalorder %s198_s19, %s198_s19 }
  0x10   :  { %p205_p8 = por %p204_p7, %p203_p6 }
  0x12   :  { %p206_p9 = pnand %p205_p8, %p199_p5 }
  0x14   :  { %209 = shalt.err (!%p206_p9)
}
  0x15   :  { %s238_s20 = smov 128   ;;  %s239_s21 = smov 8  }
  0x16   :  { %32 = dma.hbm_to_vmem [thread:$0]  %s276_s1, 384, %s27_s15, [#allocation6], %s238_s20, %s238_s20, %s239_s21  }
  0x17   :  { %230 = dma.done.wait [#allocation3], 64  }
  0x18   :  { %231 = vsyncadd [#allocation3], 4294967232 }
  0x19   :  { %232 = dma.done.wait [#allocation6], 384  }
  0x1a   :  { %233 = vsyncadd [#allocation6], 4294966912  ;;  %v240_v0 = vmov 0.0   ;;  %vm241_vm0 = vmmov 0   ;;  %vm56_vm1 = vcmask 1043456   ;;  %v43_v2 = vld [vmem:[#allocation5 + $0x8] sm:$0xff] }
  0x1b   :  { %154 = vmatprep.subr.mxu0 %v240_v0  ;;  %160 = vmatprep.mubr.msk.f32.mxu0 %vm241_vm0, %v240_v0  ;;  %v44_v1 = vld [vmem:[#allocation5 + $0x10] sm:$0xf]  ;;  %v42_v3 = vld [vmem:[#allocation5] sm:$0xff]  ;;  %v41_v4 = vld [vmem:[#allocation2] sm:$0xf]  ;;  %vm52_vm2 = vcmask 162816  }
  0x1c   :  { %155 = vmatpush3.msk.msra.mxu0 %vm56_vm1, %v44_v1  ;;  %v147_v5 = vld [vmem:[%s277_s2] ss:$0 sm:$0xff]  ;;  %s242_s24 = smov [#allocation7]  }
  0x1d   :  { %156 = vmatprep.subr.mxu0 %v240_v0  ;;  %s137_s25 = sshll.u32 %s242_s24, 4  ;;  %s138_s25 = int_to_ptr.vmem [resolvable:$true] %s137_s25 }
  0x1e   :  { %157 = vmatpush3.msra.mxu0 %v43_v2  ;;  %s210_s26 = scalar_lea.vmem %s138_s25, 64  ;;  %p215_p11 = scmp.lt.s32.totalorder %s138_s25, %s138_s25 }
  0x1f   :  { %158 = vmatprep.subr.mxu0 %v240_v0  ;;  %p211_p10 = scmp.ne.s32.totalorder %s138_s25, %s210_s26  ;;  %p216_p12 = scmp.lt.s32.totalorder %s210_s26, %s210_s26 }
  0x20   :  { %159 = vmatpush3.msra.mxu0 %v42_v3 }
  0x21   :  { %161 = vmatmul.mubr.msk.f32.vlgmr.msra.gmra.mxu0 %vm52_vm2, %v41_v4  ;;  %p217_p13 = por %p216_p12, %p215_p11 }
  0x23   :  { %p218_p0 = pnand %p217_p13, %p211_p10 }
  0xe1   :  { %v126_v6 = vpop.f32.mrf.mxu0 }
  0xe2   :  { %v127_v7 = vadd.f32 %v147_v5, %v126_v6 }
  0xe3   :  { %v162_v8 = vpop.f32.mrf.mxu0 }
  0xe4   :  { %130 = vst [vmem:[#allocation7] sm:$0xf] %v127_v7 }
  0xe5   :  { %221 = shalt.err (!%p218_p0)
}
  0xe6   :  { %140 = dma.vmem_to_hbm [thread:$0]  %s138_s25, 64, %s278_s3, [#allocation4]  }
  0xe7   :  { %234 = dma.done.wait [#allocation4], 64  }
  0xe8   :  { %235 = vsyncadd [#allocation4], 4294967232 }
  0xe9   :  { %144 = vsyncpa [#allocation3], 1 }
  0xea   :  { %145 = vsyncpa [#allocation6], 1 }
  0xeb   :  { %146 = vsyncpa [#allocation4], 1 }

</bundles_post_ra>
